<compile_context>
chip_gen: v7x
topology: tpu7x:2x2x1
jax: 0.10.0
libtpu: 0.0.40
codegen_flags: <defaults>
</compile_context>

<pallas_src>
import functools

import jax
import jax.numpy as jnp
import numpy as np
from jax.experimental import pallas as pl
from jax.experimental.pallas import tpu as pltpu


COMPUTE_DTYPE = jnp.bfloat16            # MXU operand dtype (f32 accumulation)
_VMEM_LIMIT_BYTES = 32 * 1024 * 1024    # safe on v5e/v6e/v7x (v7x phys = 64MiB)
_FUSE_WEIGHT_BYTES = 4 * 1024 * 1024    # whole-MLP fusion threshold
_FUSE_MAX_CHANNEL = 1024


def _round_up(x, m):
    return ((x + m - 1) // m) * m


def _pick_tile(padded_dim, unit, target):
    """Largest multiple-of-`unit` divisor of `padded_dim` that is <= target."""
    if padded_dim <= target:
        return padded_dim
    best = unit
    d = unit
    while d <= target:
        if padded_dim % d == 0:
            best = d
        d += unit
    return best


def _pad2(a, rows, cols):
    dr, dc = rows - a.shape[0], cols - a.shape[1]
    return jnp.pad(a, ((0, dr), (0, dc))) if (dr or dc) else a


# ---------------------------------------------------------------------------
# One-time parameter preparation (feedback: no per-forward slice/pad of W).
# ---------------------------------------------------------------------------
def prepare_params(params, compute_dtype=COMPUTE_DTYPE):
    """Split real/imag, pad channels to 128, precompute (wr+wi), cast operands
    to the MXU dtype.  Biases stay f32 (folded into the f32 accumulators)."""
    prepared = []
    for w, b in params:
        cin, cout = w.shape[0], w.shape[1]
        p_in, p_out = _round_up(cin, 128), _round_up(cout, 128)
        wr = _pad2(w[..., 0], p_in, p_out)
        wi = _pad2(w[..., 1], p_in, p_out)
        ws = wr + wi                                        # Gauss 3M slab
        br = _pad2(b[..., 0].reshape(1, cout), 1, p_out).astype(jnp.float32)
        bi = _pad2(b[..., 1].reshape(1, cout), 1, p_out).astype(jnp.float32)
        prepared.append((wr.astype(compute_dtype), wi.astype(compute_dtype),
                         ws.astype(compute_dtype), br, bi))
    return prepared


# ---------------------------------------------------------------------------
# Fused whole-MLP kernel (small-channel regime: all weights resident in VMEM,
# grid only over batch rows, layers chained in-kernel).
# ---------------------------------------------------------------------------
def _fused_mlp_kernel(n_layers, *refs):
    xr_ref, xi_ref = refs[0], refs[1]
    w_refs = refs[2:2 + 5 * n_layers]
    or_ref, oi_ref = refs[2 + 5 * n_layers], refs[3 + 5 * n_layers]

    ar = xr_ref[...]
    ai = xi_ref[...]
    for l in range(n_layers):
        wr = w_refs[5 * l + 0][...]
        wi = w_refs[5 * l + 1][...]
        ws = w_refs[5 * l + 2][...]
        br = w_refs[5 * l + 3][...]
        bi = w_refs[5 * l + 4][...]
        # Gauss 3M complex matmul (bf16 operands, f32 accumulation).
        t1 = jnp.dot(ar, wr, preferred_element_type=jnp.float32)
        t2 = jnp.dot(ai, wi, preferred_element_type=jnp.float32)
        t3 = jnp.dot(ar + ai, ws, preferred_element_type=jnp.float32)
        yr = t1 - t2 + br
        yi = t3 - t1 - t2 + bi
        yr = jnp.maximum(yr, 0.0)               # ComplexReLU: real only
        if l + 1 < n_layers:
            ar = yr.astype(wr.dtype)            # back to MXU dtype
            ai = yi.astype(wr.dtype)
        else:
            ar, ai = yr, yi
    or_ref[...] = ar.astype(or_ref.dtype)
    oi_ref[...] = ai.astype(oi_ref.dtype)


def _fused_mlp_call(xr, xi, prepared, out_dtype, compute_dtype=COMPUTE_DTYPE):
    rows = xr.shape[0]
    n_layers = len(prepared)
    c0p = prepared[0][0].shape[0]
    clp = prepared[-1][0].shape[1]

    tb = min(256, _round_up(rows, 8))
    pB = _round_up(rows, tb)
    # Give both v7x TensorCores at least one batch block when possible.
    if pB // tb == 1 and tb >= 16 and tb % 16 == 0:
        tb //= 2

    xr_p = _pad2(xr, pB, c0p).astype(compute_dtype)
    xi_p = _pad2(xi, pB, c0p).astype(compute_dtype)

    x_spec = pl.BlockSpec((tb, c0p), lambda i: (i, 0))
    in_specs = [x_spec, x_spec]
    flops = 0
    w_bytes = 0
    for (wr, wi, ws, br, bi) in prepared:
        I, O = wr.shape
        w_spec = pl.BlockSpec((I, O), lambda i: (0, 0))
        b_spec = pl.BlockSpec((1, O), lambda i: (0, 0))
        in_specs += [w_spec, w_spec, w_spec, b_spec, b_spec]
        flops += 6 * pB * I * O                 # 3 matmuls, 2 flop/MAC
        w_bytes += 3 * I * O * wr.dtype.itemsize + 2 * O * 4
    o_spec = pl.BlockSpec((tb, clp), lambda i: (i, 0))

    bytes_accessed = (2 * xr_p.size * xr_p.dtype.itemsize + w_bytes
                      + 2 * pB * clp * jnp.dtype(out_dtype).itemsize)

    args = [xr_p, xi_p]
    for layer in prepared:
        args.extend(layer)

    out_r, out_i = pl.pallas_call(
        functools.partial(_fused_mlp_kernel, n_layers),
        out_shape=(jax.ShapeDtypeStruct((pB, clp), out_dtype),
                   jax.ShapeDtypeStruct((pB, clp), out_dtype)),
        grid_spec=pltpu.PrefetchScalarGridSpec(
            num_scalar_prefetch=0,
            grid=(pB // tb,),
            in_specs=in_specs,
            out_specs=(o_spec, o_spec)),
        compiler_params=pltpu.CompilerParams(
            dimension_semantics=("parallel",),
            vmem_limit_bytes=_VMEM_LIMIT_BYTES),
        cost_estimate=pl.CostEstimate(flops=flops, transcendentals=0,
                                      bytes_accessed=bytes_accessed),
    )(*args)
    return out_r, out_i


# ---------------------------------------------------------------------------
# General tiled per-layer kernel (large channels).
# ---------------------------------------------------------------------------
def _complex_linear_relu_kernel(xr_ref, xi_ref, wr_ref, wi_ref, ws_ref,
                                br_ref, bi_ref, or_ref, oi_ref,
                                t1_ref, t2_ref, t3_ref):
    """One (i, j) tile of fused ComplexLinear + ComplexReLU, Gauss 3M form.

    t1 accumulates xr@wr (+br), t2 accumulates xi@wi, t3 accumulates
    (xr+xi)@(wr+wi) (+br+bi); real = t1 - t2, imag = t3 - t1 - t2.
    """
    k = pl.program_id(2)

    @pl.when(k == 0)
    def _():
        br = br_ref[...]
        bi = bi_ref[...]
        # Fold biases into the accumulator init (shorter epilogue).
        t1_ref[...] = jnp.zeros_like(t1_ref) + br
        t2_ref[...] = jnp.zeros_like(t2_ref)
        t3_ref[...] = jnp.zeros_like(t3_ref) + (br + bi)

    xr = xr_ref[...]
    xi = xi_ref[...]
    t1_ref[...] += jnp.dot(xr, wr_ref[...], preferred_element_type=jnp.float32)
    t2_ref[...] += jnp.dot(xi, wi_ref[...], preferred_element_type=jnp.float32)
    t3_ref[...] += jnp.dot(xr + xi, ws_ref[...],
                           preferred_element_type=jnp.float32)

    @pl.when(k == pl.num_programs(2) - 1)
    def _():
        t1 = t1_ref[...]
        t2 = t2_ref[...]
        # real = (t1+br) - t2 ; imag = (t3+br+bi) - (t1+br) - t2 = imag + bi
        or_ref[...] = jnp.maximum(t1 - t2, 0.0).astype(or_ref.dtype)
        oi_ref[...] = (t3_ref[...] - t1 - t2).astype(oi_ref.dtype)


def _complex_linear_relu_call(xr_p, xi_p, wr, wi, ws, br, bi, out_dtype,
                              tb_target=512, tk_target=1024, tn_target=512):
    """xr_p/xi_p: (pB, pI) compute dtype (already padded); wr/wi/ws: (pI, pO);
    br/bi: (1, pO) f32.  Returns two (pB, pO) arrays of out_dtype."""
    pB, pI = xr_p.shape
    pO = wr.shape[1]
    # Tiles are divisors of the (already 128-padded) dims -> no extra padding.
    tb = _pick_tile(pB, 8, tb_target)
    tk = _pick_tile(pI, 128, tk_target)
    tn = _pick_tile(pO, 128, tn_target)

    grid = (pB // tb, pO // tn, pI // tk)
    x_spec = pl.BlockSpec((tb, tk), lambda i, j, k: (i, k))
    w_spec = pl.BlockSpec((tk, tn), lambda i, j, k: (k, j))
    b_spec = pl.BlockSpec((1, tn), lambda i, j, k: (0, j))
    o_spec = pl.BlockSpec((tb, tn), lambda i, j, k: (i, j))

    bytes_in = (2 * xr_p.size * xr_p.dtype.itemsize
                + 3 * wr.size * wr.dtype.itemsize + 2 * br.size * 4)
    bytes_out = 2 * pB * pO * jnp.dtype(out_dtype).itemsize

    return pl.pallas_call(
        _complex_linear_relu_kernel,
        out_shape=(jax.ShapeDtypeStruct((pB, pO), out_dtype),
                   jax.ShapeDtypeStruct((pB, pO), out_dtype)),
        grid_spec=pltpu.PrefetchScalarGridSpec(
            num_scalar_prefetch=0,
            grid=grid,
            in_specs=[x_spec, x_spec, w_spec, w_spec, w_spec, b_spec, b_spec],
            out_specs=(o_spec, o_spec),
            scratch_shapes=[pltpu.VMEM((tb, tn), jnp.float32)] * 3),
        compiler_params=pltpu.CompilerParams(
            dimension_semantics=("parallel", "parallel", "arbitrary"),
            vmem_limit_bytes=_VMEM_LIMIT_BYTES),
        cost_estimate=pl.CostEstimate(flops=6 * pB * pI * pO,
                                      transcendentals=0,
                                      bytes_accessed=bytes_in + bytes_out),
    )(xr_p, xi_p, wr, wi, ws, br, bi)


def _tiled_mlp(xr, xi, prepared, out_dtype, compute_dtype=COMPUTE_DTYPE):
    rows = xr.shape[0]
    tb0 = min(512, _round_up(rows, 8))
    pB = _round_up(rows, tb0)
    c0p = prepared[0][0].shape[0]

    # Activations stay as padded, lane-dense bf16 slabs between layers; padded
    # channels are exactly zero so they never contribute downstream.
    ar = _pad2(xr, pB, c0p).astype(compute_dtype)
    ai = _pad2(xi, pB, c0p).astype(compute_dtype)

    n_layers = len(prepared)
    for idx, (wr, wi, ws, br, bi) in enumerate(prepared):
        last = idx == n_layers - 1
        layer_out_dtype = out_dtype if last else compute_dtype
        ar, ai = _complex_linear_relu_call(ar, ai, wr, wi, ws, br, bi,
                                           layer_out_dtype)
    return ar, ai


# ---------------------------------------------------------------------------
# Public forward.
# ---------------------------------------------------------------------------
def complex_mlp_forward(x, params, prepared=None, path=None,
                        compute_dtype=COMPUTE_DTYPE):
    """x: (..., C0, 2) -> (..., C_last, 2). params: list of (w (I,O,2), b (O,2))."""
    *lead, cin, two = x.shape
    assert two == 2
    rows = int(np.prod(lead)) if lead else 1
    if prepared is None:
        prepared = prepare_params(params, compute_dtype)
    c_last = params[-1][0].shape[1]

    # Single split + flatten in; real/imag kept as separate lane-dense slabs;
    # single stack + reshape out (never a size-2 minor dim inside the kernel).
    xr = x[..., 0].reshape(rows, cin)
    xi = x[..., 1].reshape(rows, cin)

    if path is None:
        w_bytes = sum(w.size * w.dtype.itemsize
                      for layer in prepared for w in layer[:3])
        max_chan = max(max(layer[0].shape) for layer in prepared)
        path = ("fused" if (w_bytes <= _FUSE_WEIGHT_BYTES
                            and max_chan <= _FUSE_MAX_CHANNEL) else "tiled")

    if path == "fused":
        yr, yi = _fused_mlp_call(xr, xi, prepared, out_dtype=x.dtype,
                                 compute_dtype=compute_dtype)
    else:
        yr, yi = _tiled_mlp(xr, xi, prepared, out_dtype=x.dtype,
                            compute_dtype=compute_dtype)

    out = jnp.stack([yr[:rows, :c_last], yi[:rows, :c_last]], axis=-1)
    return out.reshape(*lead, c_last, 2)


def init_params(key, channel_list, scale=0.1):
    # TODO(synk): torch nn.Linear.reset_parameters (kaiming on the (in,out,2)
    # weight) is not replicated; forward semantics only.
    params = []
    for cin, cout in zip(channel_list[:-1], channel_list[1:]):
        key, kw, kb = jax.random.split(key, 3)
        w = scale * jax.random.normal(kw, (cin, cout, 2), jnp.float32)
        b = scale * jax.random.normal(kb, (cout, 2), jnp.float32)
        params.append((w, b))
    return params


def _reference(x, params):
    """Plain-JAX f32 reference matching ComplexMLPlayer.forward."""
    xr, xi = x[..., 0], x[..., 1]
    for w, b in params:
        wr, wi = w[..., 0], w[..., 1]
        br, bi = b[..., 0], b[..., 1]
        yr = xr @ wr - xi @ wi + br
        yi = xr @ wi + xi @ wr + bi
        xr = jnp.maximum(yr, 0.0)   # ComplexReLU: real only
        xi = yi
    return jnp.stack([xr, xi], axis=-1)


def _assert_close(out, ref, tol):
    err = float(jnp.max(jnp.abs(out.astype(jnp.float32) - ref)))
    scale = float(jnp.max(jnp.abs(ref)))
    assert err <= tol * max(1.0, scale), f"max err {err} vs scale {scale}"


if __name__ == "__main__":
    key = jax.random.PRNGKey(0)
    kx, kp, kx2, kp2 = jax.random.split(key, 4)

    # --- Test 1: small channels (typical regime) -> fused whole-MLP kernel ---
    channel_list = [32, 64, 32]
    B, S = 2, 8
    x = jax.random.normal(kx, (B, S, channel_list[0], 2), dtype=jnp.float32)
    params = init_params(kp, channel_list)
    prepared = prepare_params(params)                     # one-time prep
    fwd = jax.jit(lambda xx: complex_mlp_forward(xx, params, prepared=prepared))
    out = jax.block_until_ready(fwd(x))
    ref = _reference(x, params)
    assert out.shape == (B, S, channel_list[-1], 2)
    _assert_close(out, ref, tol=2e-2)

    # --- Test 2: larger channels -> general tiled kernel (grid over B/N/K,
    # bf16 MXU operands, Gauss 3M complex matmul, bias-initialized acc) ------
    channel_list2 = [384, 1152, 256]
    rows2 = 1040
    x2 = jax.random.normal(kx2, (rows2, channel_list2[0], 2), dtype=jnp.float32)
    params2 = init_params(kp2, channel_list2, scale=0.05)
    out2 = jax.block_until_ready(
        complex_mlp_forward(x2, params2, path="tiled"))
    ref2 = _reference(x2, params2)
    assert out2.shape == (rows2, channel_list2[-1], 2)
    _assert_close(out2, ref2, tol=4e-2)

    print("KERNEL_OK")
</pallas_src>

<mosaic_0001>
module attributes {stable_mosaic.version = 11 : i64} {
  func.func @_fused_mlp_kernel(%arg0: i32, %arg1: memref<8x128xbf16, #tpu.memory_space<vmem>>, %arg2: memref<8x128xbf16, #tpu.memory_space<vmem>>, %arg3: memref<128x128xbf16, #tpu.memory_space<vmem>>, %arg4: memref<128x128xbf16, #tpu.memory_space<vmem>>, %arg5: memref<128x128xbf16, #tpu.memory_space<vmem>>, %arg6: memref<1x128xf32, #tpu.memory_space<vmem>>, %arg7: memref<1x128xf32, #tpu.memory_space<vmem>>, %arg8: memref<128x128xbf16, #tpu.memory_space<vmem>>, %arg9: memref<128x128xbf16, #tpu.memory_space<vmem>>, %arg10: memref<128x128xbf16, #tpu.memory_space<vmem>>, %arg11: memref<1x128xf32, #tpu.memory_space<vmem>>, %arg12: memref<1x128xf32, #tpu.memory_space<vmem>>, %arg13: memref<8x128xf32, #tpu.memory_space<vmem>>, %arg14: memref<8x128xf32, #tpu.memory_space<vmem>>) attributes {dimension_semantics = [#tpu.dimension_semantics<parallel>], iteration_bounds = array<i64: 2>, scalar_prefetch = 0 : i64, scratch_operands = 0 : i64, tpu.core_type = #tpu.core_type<tc>, window_params = [{transform_indices = @transform_0, window_bounds = array<i64: 8, 128>}, {transform_indices = @transform_1, window_bounds = array<i64: 8, 128>}, {pipeline_mode = #tpu.pipeline_mode<synchronous>, transform_indices = @transform_2, window_bounds = array<i64: 128, 128>}, {pipeline_mode = #tpu.pipeline_mode<synchronous>, transform_indices = @transform_3, window_bounds = array<i64: 128, 128>}, {pipeline_mode = #tpu.pipeline_mode<synchronous>, transform_indices = @transform_4, window_bounds = array<i64: 128, 128>}, {pipeline_mode = #tpu.pipeline_mode<synchronous>, transform_indices = @transform_5, window_bounds = array<i64: 1, 128>}, {pipeline_mode = #tpu.pipeline_mode<synchronous>, transform_indices = @transform_6, window_bounds = array<i64: 1, 128>}, {pipeline_mode = #tpu.pipeline_mode<synchronous>, transform_indices = @transform_7, window_bounds = array<i64: 128, 128>}, {pipeline_mode = #tpu.pipeline_mode<synchronous>, transform_indices = @transform_8, window_bounds = array<i64: 128, 128>}, {pipeline_mode = #tpu.pipeline_mode<synchronous>, transform_indices = @transform_9, window_bounds = array<i64: 128, 128>}, {pipeline_mode = #tpu.pipeline_mode<synchronous>, transform_indices = @transform_10, window_bounds = array<i64: 1, 128>}, {pipeline_mode = #tpu.pipeline_mode<synchronous>, transform_indices = @transform_11, window_bounds = array<i64: 1, 128>}, {transform_indices = @transform_12, window_bounds = array<i64: 8, 128>}, {transform_indices = @transform_13, window_bounds = array<i64: 8, 128>}]} {
    %c0 = arith.constant 0 : index
    %c0_0 = arith.constant 0 : index
    %0 = vector.load %arg1[%c0, %c0_0] : memref<8x128xbf16, #tpu.memory_space<vmem>>, vector<8x128xbf16>
    %c0_1 = arith.constant 0 : index
    %c0_2 = arith.constant 0 : index
    %1 = vector.load %arg2[%c0_1, %c0_2] : memref<8x128xbf16, #tpu.memory_space<vmem>>, vector<8x128xbf16>
    %c0_3 = arith.constant 0 : index
    %c0_4 = arith.constant 0 : index
    %2 = vector.load %arg3[%c0_3, %c0_4] : memref<128x128xbf16, #tpu.memory_space<vmem>>, vector<128x128xbf16>
    %c0_5 = arith.constant 0 : index
    %c0_6 = arith.constant 0 : index
    %3 = vector.load %arg4[%c0_5, %c0_6] : memref<128x128xbf16, #tpu.memory_space<vmem>>, vector<128x128xbf16>
    %c0_7 = arith.constant 0 : index
    %c0_8 = arith.constant 0 : index
    %4 = vector.load %arg5[%c0_7, %c0_8] : memref<128x128xbf16, #tpu.memory_space<vmem>>, vector<128x128xbf16>
    %c0_9 = arith.constant 0 : index
    %c0_10 = arith.constant 0 : index
    %5 = vector.load %arg6[%c0_9, %c0_10] : memref<1x128xf32, #tpu.memory_space<vmem>>, vector<1x128xf32>
    %c0_11 = arith.constant 0 : index
    %c0_12 = arith.constant 0 : index
    %6 = vector.load %arg7[%c0_11, %c0_12] : memref<1x128xf32, #tpu.memory_space<vmem>>, vector<1x128xf32>
    %cst = arith.constant dense<0.000000e+00> : vector<8x128xf32>
    %7 = tpu.matmul %0, %2, %cst {dimension_numbers = #tpu.dot_dimension_numbers<[1], [0], [0], [1], [0, 0, 1, 1], [], []>} : vector<8x128xbf16>, vector<128x128xbf16>, vector<8x128xf32> -> vector<8x128xf32>
    %cst_13 = arith.constant dense<0.000000e+00> : vector<8x128xf32>
    %8 = tpu.matmul %1, %3, %cst_13 {dimension_numbers = #tpu.dot_dimension_numbers<[1], [0], [0], [1], [0, 0, 1, 1], [], []>} : vector<8x128xbf16>, vector<128x128xbf16>, vector<8x128xf32> -> vector<8x128xf32>
    %9 = arith.addf %0, %1 : vector<8x128xbf16>
    %cst_14 = arith.constant dense<0.000000e+00> : vector<8x128xf32>
    %10 = tpu.matmul %9, %4, %cst_14 {dimension_numbers = #tpu.dot_dimension_numbers<[1], [0], [0], [1], [0, 0, 1, 1], [], []>} : vector<8x128xbf16>, vector<128x128xbf16>, vector<8x128xf32> -> vector<8x128xf32>
    %11 = arith.subf %7, %8 : vector<8x128xf32>
    %12 = vector.broadcast %5 : vector<1x128xf32> to vector<8x128xf32>
    %13 = arith.addf %11, %12 : vector<8x128xf32>
    %14 = arith.subf %10, %7 : vector<8x128xf32>
    %15 = arith.subf %14, %8 : vector<8x128xf32>
    %16 = vector.broadcast %6 : vector<1x128xf32> to vector<8x128xf32>
    %17 = arith.addf %15, %16 : vector<8x128xf32>
    %cst_15 = arith.constant 0.000000e+00 : f32
    %18 = vector.broadcast %cst_15 : f32 to vector<8x128xf32>
    %19 = arith.maximumf %13, %18 : vector<8x128xf32>
    %20 = arith.truncf %19 : vector<8x128xf32> to vector<8x128xbf16>
    %21 = arith.truncf %17 : vector<8x128xf32> to vector<8x128xbf16>
    %c0_16 = arith.constant 0 : index
    %c0_17 = arith.constant 0 : index
    %22 = vector.load %arg8[%c0_16, %c0_17] : memref<128x128xbf16, #tpu.memory_space<vmem>>, vector<128x128xbf16>
    %c0_18 = arith.constant 0 : index
    %c0_19 = arith.constant 0 : index
    %23 = vector.load %arg9[%c0_18, %c0_19] : memref<128x128xbf16, #tpu.memory_space<vmem>>, vector<128x128xbf16>
    %c0_20 = arith.constant 0 : index
    %c0_21 = arith.constant 0 : index
    %24 = vector.load %arg10[%c0_20, %c0_21] : memref<128x128xbf16, #tpu.memory_space<vmem>>, vector<128x128xbf16>
    %c0_22 = arith.constant 0 : index
    %c0_23 = arith.constant 0 : index
    %25 = vector.load %arg11[%c0_22, %c0_23] : memref<1x128xf32, #tpu.memory_space<vmem>>, vector<1x128xf32>
    %c0_24 = arith.constant 0 : index
    %c0_25 = arith.constant 0 : index
    %26 = vector.load %arg12[%c0_24, %c0_25] : memref<1x128xf32, #tpu.memory_space<vmem>>, vector<1x128xf32>
    %cst_26 = arith.constant dense<0.000000e+00> : vector<8x128xf32>
    %27 = tpu.matmul %20, %22, %cst_26 {dimension_numbers = #tpu.dot_dimension_numbers<[1], [0], [0], [1], [0, 0, 1, 1], [], []>} : vector<8x128xbf16>, vector<128x128xbf16>, vector<8x128xf32> -> vector<8x128xf32>
    %cst_27 = arith.constant dense<0.000000e+00> : vector<8x128xf32>
    %28 = tpu.matmul %21, %23, %cst_27 {dimension_numbers = #tpu.dot_dimension_numbers<[1], [0], [0], [1], [0, 0, 1, 1], [], []>} : vector<8x128xbf16>, vector<128x128xbf16>, vector<8x128xf32> -> vector<8x128xf32>
    %29 = arith.addf %20, %21 : vector<8x128xbf16>
    %cst_28 = arith.constant dense<0.000000e+00> : vector<8x128xf32>
    %30 = tpu.matmul %29, %24, %cst_28 {dimension_numbers = #tpu.dot_dimension_numbers<[1], [0], [0], [1], [0, 0, 1, 1], [], []>} : vector<8x128xbf16>, vector<128x128xbf16>, vector<8x128xf32> -> vector<8x128xf32>
    %31 = arith.subf %27, %28 : vector<8x128xf32>
    %32 = vector.broadcast %25 : vector<1x128xf32> to vector<8x128xf32>
    %33 = arith.addf %31, %32 : vector<8x128xf32>
    %34 = arith.subf %30, %27 : vector<8x128xf32>
    %35 = arith.subf %34, %28 : vector<8x128xf32>
    %36 = vector.broadcast %26 : vector<1x128xf32> to vector<8x128xf32>
    %37 = arith.addf %35, %36 : vector<8x128xf32>
    %cst_29 = arith.constant 0.000000e+00 : f32
    %38 = vector.broadcast %cst_29 : f32 to vector<8x128xf32>
    %39 = arith.maximumf %33, %38 : vector<8x128xf32>
    %c0_30 = arith.constant 0 : index
    %c0_31 = arith.constant 0 : index
    %40 = vector.load %arg13[%c0_30, %c0_31] : memref<8x128xf32, #tpu.memory_space<vmem>>, vector<8x128xf32>
    tpu.vector_store %arg13[%c0_30, %c0_31], %39 {strides = array<i32>} : memref<8x128xf32, #tpu.memory_space<vmem>>, vector<8x128xf32>,
    %c0_32 = arith.constant 0 : index
    %c0_33 = arith.constant 0 : index
    %41 = vector.load %arg14[%c0_32, %c0_33] : memref<8x128xf32, #tpu.memory_space<vmem>>, vector<8x128xf32>
    tpu.vector_store %arg14[%c0_32, %c0_33], %37 {strides = array<i32>} : memref<8x128xf32, #tpu.memory_space<vmem>>, vector<8x128xf32>,
    return
  }
  func.func @transform_0(%arg0: i32) -> (i32, i32) {
    %c0_i32 = arith.constant 0 : i32
    %c0_i32_0 = arith.constant 0 : i32
    return %arg0, %c0_i32 : i32, i32
  }
  func.func @transform_1(%arg0: i32) -> (i32, i32) {
    %c0_i32 = arith.constant 0 : i32
    %c0_i32_0 = arith.constant 0 : i32
    return %arg0, %c0_i32 : i32, i32
  }
  func.func @transform_2(%arg0: i32) -> (i32, i32) {
    %c0_i32 = arith.constant 0 : i32
    %c0_i32_0 = arith.constant 0 : i32
    %c0_i32_1 = arith.constant 0 : i32
    return %c0_i32, %c0_i32_0 : i32, i32
  }
  func.func @transform_3(%arg0: i32) -> (i32, i32) {
    %c0_i32 = arith.constant 0 : i32
    %c0_i32_0 = arith.constant 0 : i32
    %c0_i32_1 = arith.constant 0 : i32
    return %c0_i32, %c0_i32_0 : i32, i32
  }
  func.func @transform_4(%arg0: i32) -> (i32, i32) {
    %c0_i32 = arith.constant 0 : i32
    %c0_i32_0 = arith.constant 0 : i32
    %c0_i32_1 = arith.constant 0 : i32
    return %c0_i32, %c0_i32_0 : i32, i32
  }
  func.func @transform_5(%arg0: i32) -> (i32, i32) {
    %c0_i32 = arith.constant 0 : i32
    %c0_i32_0 = arith.constant 0 : i32
    %c0_i32_1 = arith.constant 0 : i32
    return %c0_i32, %c0_i32_0 : i32, i32
  }
  func.func @transform_6(%arg0: i32) -> (i32, i32) {
    %c0_i32 = arith.constant 0 : i32
    %c0_i32_0 = arith.constant 0 : i32
    %c0_i32_1 = arith.constant 0 : i32
    return %c0_i32, %c0_i32_0 : i32, i32
  }
  func.func @transform_7(%arg0: i32) -> (i32, i32) {
    %c0_i32 = arith.constant 0 : i32
    %c0_i32_0 = arith.constant 0 : i32
    %c0_i32_1 = arith.constant 0 : i32
    return %c0_i32, %c0_i32_0 : i32, i32
  }
  func.func @transform_8(%arg0: i32) -> (i32, i32) {
    %c0_i32 = arith.constant 0 : i32
    %c0_i32_0 = arith.constant 0 : i32
    %c0_i32_1 = arith.constant 0 : i32
    return %c0_i32, %c0_i32_0 : i32, i32
  }
  func.func @transform_9(%arg0: i32) -> (i32, i32) {
    %c0_i32 = arith.constant 0 : i32
    %c0_i32_0 = arith.constant 0 : i32
    %c0_i32_1 = arith.constant 0 : i32
    return %c0_i32, %c0_i32_0 : i32, i32
  }
  func.func @transform_10(%arg0: i32) -> (i32, i32) {
    %c0_i32 = arith.constant 0 : i32
    %c0_i32_0 = arith.constant 0 : i32
    %c0_i32_1 = arith.constant 0 : i32
    return %c0_i32, %c0_i32_0 : i32, i32
  }
  func.func @transform_11(%arg0: i32) -> (i32, i32) {
    %c0_i32 = arith.constant 0 : i32
    %c0_i32_0 = arith.constant 0 : i32
    %c0_i32_1 = arith.constant 0 : i32
    return %c0_i32, %c0_i32_0 : i32, i32
  }
  func.func @transform_12(%arg0: i32) -> (i32, i32) {
    %c0_i32 = arith.constant 0 : i32
    %c0_i32_0 = arith.constant 0 : i32
    return %arg0, %c0_i32 : i32, i32
  }
  func.func @transform_13(%arg0: i32) -> (i32, i32) {
    %c0_i32 = arith.constant 0 : i32
    %c0_i32_0 = arith.constant 0 : i32
    return %arg0, %c0_i32 : i32, i32
  }
}

</mosaic_0001>

<bundles_post_ra>
// kernel: _lambda_.1
= control target key start
LH: loop header
LB: loop body
LE: loop exit
PB: predicated region body
PF: predicated region fallthrough
CT: control target
= control target key end

     0   :  { %s2181_s0 = inlined_call_operand.vmem [shape: bf16[16,128], index: 0, kind: input, shape index: {}]   ;;  %s2182_s1 = inlined_call_operand.vmem [shape: bf16[16,128], index: 1, kind: input, shape index: {}]   ;;  %s2183_s2 = inlined_call_operand.hbm [shape: bf16[128,128], index: 2, kind: input, shape index: {}]   ;;  %s2184_s3 = inlined_call_operand.hbm [shape: bf16[128,128], index: 3, kind: input, shape index: {}]   ;;  %s2185_s4 = inlined_call_operand.hbm [shape: bf16[128,128], index: 4, kind: input, shape index: {}]   ;;  %s2186_s5 = inlined_call_operand.vmem [shape: f32[1,128], index: 5, kind: input, shape index: {}]   ;;  %s2187_s6 = inlined_call_operand.vmem [shape: f32[1,128], index: 6, kind: input, shape index: {}]   ;;  %s2188_s7 = inlined_call_operand.hbm [shape: bf16[128,128], index: 7, kind: input, shape index: {}]   ;;  %s2189_s8 = inlined_call_operand.vmem [shape: bf16[128,128], index: 8, kind: input, shape index: {}]   ;;  %s2190_s9 = inlined_call_operand.vmem [shape: bf16[128,128], index: 9, kind: input, shape index: {}]   ;;  %s2191_s10 = inlined_call_operand.vmem [shape: f32[1,128], index: 10, kind: input, shape index: {}]   ;;  %s2192_s11 = inlined_call_operand.vmem [shape: f32[1,128], index: 11, kind: input, shape index: {}]   ;;  %s2193_s12 = inlined_call_operand.vmem [shape: f32[16,128], index: 12, kind: output, shape index: {0}]   ;;  %s2194_s13 = inlined_call_operand.vmem [shape: f32[16,128], index: 13, kind: output, shape index: {1}]  }
   0x1   :  { %2198 = sst [smem:[#allocation13_spill]] %s2192_s11 }
   0x2   :  { %2199 = sst [smem:[#allocation14_spill]] %s2194_s13 }
   0x3   :  { %19 = vsyncpa [#allocation3], 0 }
   0x4   :  { %20 = vsyncpa [#allocation5], 0 }
   0x5   :  { %21 = vsyncpa [#allocation8], 0  ;;  %s1889_s25 = smov 0  }
   0x6 LB: > { %2200 = sst [smem:[#allocation12_spill]] %s1809_s25  ;;  %s1895_s26 = sadd.s32 4294967295, %s1809_s25   ;;  %s1809_s25 = sphi %s1889_s25, %s27_s25  }
   0x7   : > { %p1335_p0 = scmp.ge.s32.totalorder %s1809_s25, 1  ;;  %p346_p1 = scmp.lt.s32.totalorder %s1809_s25, 3 }
   0x8   : > { %p2196_p2 = scmp.eq.s32.totalorder %s1895_s26, 0  ;;  %s1811_s28 = smov [#allocation4]  }
   0x9   : > { %p1900_p3 = pnand %p1335_p0, %p346_p1  ;;  %s371_s29 = sshll.u32 %s1811_s28, 4  ;;  %s1904_s29 = int_to_ptr.vmem [resolvable:$true] %s371_s29 }
   0xa   : > { %s1812_s30 = smov [#allocation2]   ;;  %s1813_s16 = smov [#allocation6]  }
   0xb   : > { %s2201_s27 = scalar_select %p1900_p3, 1, 0 }
   0xc   : > { %p1594_p4 = pneg %p1900_p3  ;;  %s358_s14 = sshll.u32 %s1812_s30, 4  ;;  %s1908_s14 = int_to_ptr.vmem [resolvable:$true] %s358_s14 }
   0xd   : > { %s384_s17 = sshll.u32 %s1813_s16, 4  ;;  %s1814_s18 = smov [#allocation7]   ;;  %s1916_s17 = int_to_ptr.vmem [resolvable:$true] %s384_s17 }
   0xe   : > { %p1912_p5 = pnand %p2196_p2, %p1594_p4  ;;  %s1918_s19 = sshll.u32 %s1814_s18, 4  ;;  %s404_s19 = int_to_ptr.vmem [resolvable:$true] %s1918_s19 }
   0xf   : > { %s1679_s22 = scalar_lea.hbm %s2184_s3, 1024 }
  0x10   : > { %p1680_p6 = scmp.ne.s32.totalorder %s2184_s3, %s1679_s22  ;;  %p1928_p7 = pneg %p1912_p5 }
  0x11   : > { %p1686_p10 = scmp.lt.u32.totalorder %s1679_s22, %s2184_s3 }
  0x12   : > { %p1682_p8 = pnand %p1928_p7, %p1680_p6 }
  0x14   : > { %p1683_p9 = pneg %p1682_p8 }
  0x16   : > { %p1688_p11 = pnand %p1686_p10, %p1683_p9 }
  0x18   : > { %1691 = shalt.err (!%p1688_p11)
}
  0x19   : > { %s1692_s18 = scalar_lea.vmem %s1904_s29, 1024  ;;  %p1700_p1 = scmp.lt.s32.totalorder %s1904_s29, %s1904_s29 }
  0x1a   : > { %p1693_p12 = scmp.ne.s32.totalorder %s1904_s29, %s1692_s18  ;;  %p1701_p4 = scmp.lt.s32.totalorder %s1692_s18, %s1692_s18 }
  0x1c   : > { %p1695_p13 = pnand %p1693_p12, %p1928_p7  ;;  %p1702_p6 = por %p1701_p4, %p1700_p1 }
  0x1e   : > { %p1696_p0 = pneg %p1695_p13 }
  0x20   : > { %p1703_p8 = pnand %p1702_p6, %p1696_p0 }
  0x22   : > { %1706 = shalt.err (!%p1703_p8)
}
  0x23   : > { %s1815_s20 = smov 64   ;;  %s1816_s21 = smov 4  }
  0x24   : > { %1600 = dma.hbm_to_vmem [thread:$0]  (!%p1912_p5), %s2184_s3, 1024, %s1904_s29, [#allocation5], %s1815_s20, %s1815_s20, %s1816_s21  }
  0x25   : > { %s1707_s16 = scalar_lea.hbm %s2183_s2, 1024 }
  0x26   : > { %p1708_p9 = scmp.ne.s32.totalorder %s2183_s2, %s1707_s16  ;;  %p1714_p12 = scmp.lt.u32.totalorder %s1707_s16, %s2183_s2 }
  0x28   : > { %p1710_p10 = pnand %p1708_p9, %p1928_p7 }
  0x2a   : > { %p1711_p11 = pneg %p1710_p10 }
  0x2c   : > { %p1716_p13 = pnand %p1714_p12, %p1711_p11 }
  0x2e   : > { %1719 = shalt.err (!%p1716_p13)
}
  0x2f   : > { %s1720_s29 = scalar_lea.vmem %s1908_s14, 1024  ;;  %p1728_p6 = scmp.lt.s32.totalorder %s1908_s14, %s1908_s14 }
  0x30   : > { %p1721_p0 = scmp.ne.s32.totalorder %s1908_s14, %s1720_s29  ;;  %p1729_p8 = scmp.lt.s32.totalorder %s1720_s29, %s1720_s29 }
  0x32   : > { %p1723_p1 = pnand %p1721_p0, %p1928_p7  ;;  %p1730_p9 = por %p1729_p8, %p1728_p6 }
  0x34   : > { %p1724_p4 = pneg %p1723_p1 }
  0x36   : > { %p1731_p10 = pnand %p1730_p9, %p1724_p4 }
  0x38   : > { %1734 = shalt.err (!%p1731_p10)
}
  0x39   : > { %1597 = dma.hbm_to_vmem [thread:$0]  (!%p1912_p5), %s2183_s2, 1024, %s1908_s14, [#allocation3], %s1815_s20, %s1815_s20, %s1816_s21  }
  0x3a   : > { %s1735_s23 = scalar_lea.hbm %s2185_s4, 1024 }
  0x3b   : > { %p1736_p11 = scmp.ne.s32.totalorder %s2185_s4, %s1735_s23  ;;  %p1742_p0 = scmp.lt.u32.totalorder %s1735_s23, %s2185_s4 }
  0x3d   : > { %p1738_p12 = pnand %p1736_p11, %p1928_p7 }
  0x3f   : > { %p1739_p13 = pneg %p1738_p12 }
  0x41   : > { %p1744_p1 = pnand %p1742_p0, %p1739_p13 }
  0x43   : > { %1747 = shalt.err (!%p1744_p1)
}
  0x44   : > { %s1748_s14 = scalar_lea.vmem %s1916_s17, 1024  ;;  %p1756_p9 = scmp.lt.s32.totalorder %s1916_s17, %s1916_s17 }
  0x45   : > { %p1749_p4 = scmp.ne.s32.totalorder %s1916_s17, %s1748_s14  ;;  %p1757_p10 = scmp.lt.s32.totalorder %s1748_s14, %s1748_s14 }
  0x47   : > { %p1751_p6 = pnand %p1749_p4, %p1928_p7  ;;  %p1758_p11 = por %p1757_p10, %p1756_p9 }
  0x49   : > { %p1752_p8 = pneg %p1751_p6 }
  0x4b   : > { %p1759_p12 = pnand %p1758_p11, %p1752_p8 }
  0x4d   : > { %1762 = shalt.err (!%p1759_p12)
}
  0x4e   : > { %1603 = dma.hbm_to_vmem [thread:$0]  (!%p1912_p5), %s2185_s4, 1024, %s1916_s17, [#allocation5], %s1815_s20, %s1815_s20, %s1816_s21  }
  0x4f   : > { %s1763_s22 = scalar_lea.hbm %s2188_s7, 1024 }
  0x50   : > { %p1764_p13 = scmp.ne.s32.totalorder %s2188_s7, %s1763_s22  ;;  %p1770_p4 = scmp.lt.u32.totalorder %s1763_s22, %s2188_s7 }
  0x52   : > { %p1766_p0 = pnand %p1764_p13, %p1928_p7 }
  0x54   : > { %p1767_p1 = pneg %p1766_p0 }
  0x56   : > { %p1772_p6 = pnand %p1770_p4, %p1767_p1 }
  0x58   : > { %1775 = shalt.err (!%p1772_p6)
}
  0x59   : > { %s1776_s18 = scalar_lea.vmem %s404_s19, 1024  ;;  %p1784_p11 = scmp.lt.s32.totalorder %s404_s19, %s404_s19 }
  0x5a   : > { %p1777_p8 = scmp.ne.s32.totalorder %s404_s19, %s1776_s18  ;;  %p1785_p12 = scmp.lt.s32.totalorder %s1776_s18, %s1776_s18 }
  0x5c   : > { %p1779_p9 = pnand %p1777_p8, %p1928_p7  ;;  %p1786_p2 = por %p1785_p12, %p1784_p11 }
  0x5e   : > { %p1780_p10 = pneg %p1779_p9 }
  0x60   : > { %p1787_p3 = pnand %p1786_p2, %p1780_p10 }
  0x62   : > { %1790 = shalt.err (!%p1787_p3)
}
  0x63   : > { %1606 = dma.hbm_to_vmem [thread:$0]  (!%p1912_p5), %s2188_s7, 1024, %s404_s19, [#allocation8], %s1815_s20, %s1815_s20, %s1816_s21  }
  0x64   : > { %p2204_p13 = scmp.ne.s32.totalorder %s2201_s27, 0 }
  0x65   : > { %p2205_p7 = scmp.eq.s32.totalorder (!%p2204_p13), %s1895_s26, 0 }
  0x66   : > { %445 = sbr.rel (%p2204_p13) target bundleno = 624 (0x270), region = 68 }
  0x6d   : > { %1796 = dma.done.wait (%p2205_p7), [#allocation3], 1024   ;;  %p2206_p0 = pmov %p2205_p7 }
  0x6f   : > { %1798 = vsyncadd (%p2206_p0), [#allocation3], 4294966272  ;;  %p2207_p2 = pmov %p2206_p0 }
  0x70   : > { %p2208_p3 = pmov %p2206_p0 }
  0x71   : > { %1800 = dma.done.wait (%p2207_p2), [#allocation5], 2048  }
  0x72   : > { %1802 = vsyncadd (%p2208_p3), [#allocation5], 4294965248  ;;  %p2209_p1 = pmov %p2206_p0 }
  0x73   : > { %p2210_p5 = pmov %p2206_p0 }
  0x74   : > { %1804 = dma.done.wait (%p2209_p1), [#allocation8], 1024  }
  0x75   : > { %1806 = vsyncadd (%p2210_p5), [#allocation8], 4294966272  ;;  %v1817_v0 = vmov 0.0   ;;  %vm1818_vm0 = vmmov 0   ;;  %v1631_v1 = vld [vmem:[#allocation2] sm:$0xff]   ;;  %v1633_v3 = vld [vmem:[#allocation2 + $0x8] sm:$0xff]  }
  0x76   : > { %1458 = vmatprep.subr.bf16.mxu0 %v1817_v0  ;;  %1478 = vmatprep.subr.bf16.mxu1 %v1817_v0  ;;  %v1632_v2 = vld [vmem:[#allocation4] sm:$0xff]   ;;  %v1634_v4 = vld [vmem:[#allocation4 + $0x8] sm:$0xff]   ;;  %v1635_v5 = vld [vmem:[#allocation2 + $0x10] sm:$0xff]   ;;  %p507_p4 = scmp.lt.s32.totalorder %s1895_s26, 1  ;;  %s2211_s18 = sld [smem:[#allocation13_spill]] }
  0x77   : > { %1474 = vmatprep.mubr.msk.bf16.mxu0 %vm1818_vm0, %v1817_v0  ;;  %1494 = vmatprep.mubr.msk.bf16.mxu1 %vm1818_vm0, %v1817_v0  ;;  %v1636_v6 = vld [vmem:[#allocation4 + $0x10] sm:$0xff]   ;;  %v1637_v7 = vld [vmem:[#allocation2 + $0x18] sm:$0xff]   ;;  %v1639_v9 = vld [vmem:[#allocation2 + $0x20] sm:$0xff]   ;;  %s2212_s14 = sld [smem:[#allocation14_spill]] }
  0x78   : > { %1459 = vmatpush3.bf16.msra.mxu0 %v1631_v1  ;;  %1479 = vmatpush3.bf16.msra.mxu1 %v1632_v2  ;;  %v1638_v8 = vld [vmem:[#allocation4 + $0x18] sm:$0xff]   ;;  %v1640_v10 = vld [vmem:[#allocation4 + $0x20] sm:$0xff]   ;;  %v1641_v11 = vld [vmem:[#allocation2 + $0x28] sm:$0xff]   ;;  %s2215_s26 = smov (!%p507_p4, %s1895_s26), 1 }
  0x79   : > { %1460 = vmatprep.subr.bf16.mxu0 %v1817_v0  ;;  %1480 = vmatprep.subr.bf16.mxu1 %v1817_v0  ;;  %v1642_v12 = vld [vmem:[#allocation4 + $0x28] sm:$0xff]   ;;  %v1643_v13 = vld [vmem:[#allocation2 + $0x30] sm:$0xff]   ;;  %s1346_s27 = sshll.u32 %s2215_s26, 2  ;;  %v1645_v15 = vld [vmem:[#allocation2 + $0x38] sm:$0xff]   ;;  %s1348_s25 = sshll.u32 %s2215_s26, 3 }
  0x7a   : > { %v1644_v14 = vld [vmem:[#allocation4 + $0x30] sm:$0xff]   ;;  %s510_s28 = scalar_lea.vmem %s2181_s0, %s1346_s27  ;;  %s514_s29 = scalar_lea.vmem %s2182_s1, %s1346_s27  ;;  %v1646_v16 = vld [vmem:[#allocation4 + $0x38] sm:$0xff]   ;;  %v1647_v19 = vld [vmem:[#allocation6] sm:$0xff]  }
  0x7b   : > { %v524_v17 = vld [vmem:[%s510_s28] sm:$0xf]  ;;  %v1648_v21 = vld [vmem:[#allocation6 + $0x8] sm:$0xff]   ;;  %v1649_v23 = vld [vmem:[#allocation6 + $0x10] sm:$0xff]   ;;  %s518_s24 = scalar_lea.vmem %s2193_s12, %s1348_s25 }
  0x7c   : > { %1461 = vmatpush3.bf16.msra.mxu0 %v1633_v3  ;;  %1481 = vmatpush3.bf16.msra.mxu1 %v1634_v4  ;;  %v525_v18 = vld [vmem:[%s514_s29] sm:$0xf]  ;;  %v1656_v22 = vld [vmem:[#allocation7 + $0x8] sm:$0xff]   ;;  %v1657_v24 = vld [vmem:[#allocation7 + $0x10] sm:$0xff]  }
  0x7d   : > { %1462 = vmatprep.subr.bf16.mxu0 %v1817_v0  ;;  %1482 = vmatprep.subr.bf16.mxu1 %v1817_v0  ;;  %v1655_v20 = vld [vmem:[#allocation7] sm:$0xff]   ;;  %v1650_v25 = vld [vmem:[#allocation6 + $0x18] sm:$0xff]   ;;  %v1652_v29 = vld [vmem:[#allocation6 + $0x28] sm:$0xff]   ;;  %v752_v33 = vadd.bf16 %v525_v18, %v524_v17  ;;  %s522_s27 = scalar_lea.vmem %s2212_s14, %s1348_s25 }
  0x7e   : > { %v1658_v26 = vld [vmem:[#allocation7 + $0x18] sm:$0xff]   ;;  %v1651_v27 = vld [vmem:[#allocation6 + $0x20] sm:$0xff]   ;;  %v1660_v30 = vld [vmem:[#allocation7 + $0x28] sm:$0xff]  }
  0x7f   : > { %v1659_v28 = vld [vmem:[#allocation7 + $0x20] sm:$0xff]   ;;  %v1653_v31 = vld [vmem:[#allocation6 + $0x30] sm:$0xff]   ;;  %v1654_v32 = vld [vmem:[#allocation6 + $0x38] sm:$0xff]  }
  0x80   : > { %1463 = vmatpush3.bf16.msra.mxu0 %v1635_v5  ;;  %1483 = vmatpush3.bf16.msra.mxu1 %v1636_v6  ;;  %v1661_v34 = vld [vmem:[#allocation7 + $0x30] sm:$0xff]   ;;  %v1662_v35 = vld [vmem:[#allocation7 + $0x38] sm:$0xff]   ;;  %v1663_v36 = vld [vmem:[%s2189_s8] sm:$0xff]  }
  0x81   : > { %1464 = vmatprep.subr.bf16.mxu0 %v1817_v0  ;;  %1484 = vmatprep.subr.bf16.mxu1 %v1817_v0  ;;  %v1665_v37 = vld [vmem:[%s2189_s8 + $0x8] sm:$0xff]   ;;  %v1667_v38 = vld [vmem:[%s2189_s8 + $0x10] sm:$0xff]   ;;  %v1669_v39 = vld [vmem:[%s2189_s8 + $0x18] sm:$0xff]  }
  0x82   : > { %v1671_v40 = vld [vmem:[%s2189_s8 + $0x20] sm:$0xff]   ;;  %v1673_v41 = vld [vmem:[%s2189_s8 + $0x28] sm:$0xff]   ;;  %v1675_v42 = vld [vmem:[%s2189_s8 + $0x30] sm:$0xff]  }
  0x83   : > { %v1677_v43 = vld [vmem:[%s2189_s8 + $0x38] sm:$0xff]   ;;  %v1374_v45 = vld [vmem:[%s2186_s5] ss:$0 sm:$0xff]  ;;  %v1666_v58 = vld [vmem:[%s2190_s9 + $0x8] sm:$0xff]  }
  0x84   : > { %1465 = vmatpush3.bf16.msra.mxu0 %v1637_v7  ;;  %1485 = vmatpush3.bf16.msra.mxu1 %v1638_v8  ;;  %v1664_v56 = vld [vmem:[%s2190_s9] sm:$0xff]   ;;  %v1668_v59 = vld [vmem:[%s2190_s9 + $0x10] sm:$0xff]   ;;  %v1670_v60 = vld [vmem:[%s2190_s9 + $0x18] sm:$0xff]  }
  0x85   : > { %1466 = vmatprep.subr.bf16.mxu0 %v1817_v0  ;;  %1486 = vmatprep.subr.bf16.mxu1 %v1817_v0  ;;  %v1672_v61 = vld [vmem:[%s2190_s9 + $0x20] sm:$0xff]   ;;  %v1674_v62 = vld [vmem:[%s2190_s9 + $0x28] sm:$0xff]   ;;  %v1676_v63 = vld [vmem:[%s2190_s9 + $0x30] sm:$0xff]  }
  0x86   : > { %v1375_v4 = vld [vmem:[%s2187_s6] ss:$0 sm:$0xff]  ;;  %v1678_v8 = vld [vmem:[%s2190_s9 + $0x38] sm:$0xff]  }
  0x88   : > { %1467 = vmatpush3.bf16.msra.mxu0 %v1639_v9  ;;  %1487 = vmatpush3.bf16.msra.mxu1 %v1640_v10 }
  0x89   : > { %1468 = vmatprep.subr.bf16.mxu0 %v1817_v0  ;;  %1488 = vmatprep.subr.bf16.mxu1 %v1817_v0 }
  0x8c   : > { %1469 = vmatpush3.bf16.msra.mxu0 %v1641_v11  ;;  %1489 = vmatpush3.bf16.msra.mxu1 %v1642_v12 }
  0x8d   : > { %1470 = vmatprep.subr.bf16.mxu0 %v1817_v0  ;;  %1490 = vmatprep.subr.bf16.mxu1 %v1817_v0 }
  0x90   : > { %1471 = vmatpush3.bf16.msra.mxu0 %v1643_v13  ;;  %1491 = vmatpush3.bf16.msra.mxu1 %v1644_v14 }
  0x91   : > { %1472 = vmatprep.subr.bf16.mxu0 %v1817_v0  ;;  %1492 = vmatprep.subr.bf16.mxu1 %v1817_v0 }
  0x94   : > { %1473 = vmatpush3.bf16.msra.mxu0 %v1645_v15  ;;  %1493 = vmatpush3.bf16.msra.mxu1 %v1646_v16  ;;  %v1400_v16 = vld [vmem:[%s2191_s10] ss:$0 sm:$0xff] }
  0x95   : > { %1498 = vmatprep.subr.bf16.mxu0 %v1817_v0  ;;  %1518 = vmatprep.subr.bf16.mxu1 %v1817_v0 }
  0x97   : > { %1475 = vmatmul.mubr.bf16.vlgmr.msra.gmra.mrb[0].mxu0 %v524_v17  ;;  %1495 = vmatmul.mubr.bf16.vlgmr.msra.gmra.mrb[0].mxu1 %v525_v18 }
  0x98   : > { %1499 = vmatpush3.bf16.msra.mxu0 %v1647_v19  ;;  %1514 = vmatprep.mubr.msk.bf16.mxu0 %vm1818_vm0, %v1817_v0 }
  0x99   : > { %1500 = vmatprep.subr.bf16.mxu0 %v1817_v0  ;;  %1519 = vmatpush3.bf16.msra.mxu1 %v1655_v20 }
  0x9a   : > { %1534 = vmatprep.mubr.msk.bf16.mxu1 %vm1818_vm0, %v1817_v0  ;;  %1520 = vmatprep.subr.bf16.mxu1 %v1817_v0 }
  0x9c   : > { %1501 = vmatpush3.bf16.msra.mxu0 %v1648_v21 }
  0x9d   : > { %1502 = vmatprep.subr.bf16.mxu0 %v1817_v0  ;;  %1521 = vmatpush3.bf16.msra.mxu1 %v1656_v22 }
  0x9e   : > { %1522 = vmatprep.subr.bf16.mxu1 %v1817_v0 }
  0xa0   : > { %1503 = vmatpush3.bf16.msra.mxu0 %v1649_v23 }
  0xa1   : > { %1504 = vmatprep.subr.bf16.mxu0 %v1817_v0  ;;  %1523 = vmatpush3.bf16.msra.mxu1 %v1657_v24 }
  0xa2   : > { %1524 = vmatprep.subr.bf16.mxu1 %v1817_v0 }
  0xa4   : > { %1505 = vmatpush3.bf16.msra.mxu0 %v1650_v25  ;;  %v1401_v25 = vld [vmem:[%s2211_s18] ss:$0 sm:$0xff] }
  0xa5   : > { %1506 = vmatprep.subr.bf16.mxu0 %v1817_v0  ;;  %1525 = vmatpush3.bf16.msra.mxu1 %v1658_v26 }
  0xa6   : > { %1526 = vmatprep.subr.bf16.mxu1 %v1817_v0 }
  0xa8   : > { %1507 = vmatpush3.bf16.msra.mxu0 %v1651_v27 }
  0xa9   : > { %1508 = vmatprep.subr.bf16.mxu0 %v1817_v0  ;;  %1527 = vmatpush3.bf16.msra.mxu1 %v1659_v28 }
  0xaa   : > { %1528 = vmatprep.subr.bf16.mxu1 %v1817_v0 }
  0xac   : > { %1509 = vmatpush3.bf16.msra.mxu0 %v1652_v29 }
  0xad   : > { %1510 = vmatprep.subr.bf16.mxu0 %v1817_v0  ;;  %1529 = vmatpush3.bf16.msra.mxu1 %v1660_v30 }
  0xae   : > { %1530 = vmatprep.subr.bf16.mxu1 %v1817_v0 }
  0xb0   : > { %1511 = vmatpush3.bf16.msra.mxu0 %v1653_v31 }
  0xb1   : > { %1512 = vmatprep.subr.bf16.mxu0 %v1817_v0  ;;  %1531 = vmatpush3.bf16.msra.mxu1 %v1661_v34 }
  0xb2   : > { %1532 = vmatprep.subr.bf16.mxu1 %v1817_v0 }
  0xb4   : > { %1513 = vmatpush3.bf16.msra.mxu0 %v1654_v32 }
  0xb5   : > { %1538 = vmatprep.subr.bf16.mxu0 %v1817_v0  ;;  %1533 = vmatpush3.bf16.msra.mxu1 %v1662_v35 }
  0xb6   : > { %1558 = vmatprep.subr.bf16.mxu1 %v1817_v0 }
  0xb7   : > { %1515 = vmatmul.mubr.bf16.vlgmr.msra.gmra.mrb[4].mxu0 %v752_v33 }
  0xb8   : > { %1554 = vmatprep.mubr.msk.bf16.mxu0 %vm1818_vm0, %v1817_v0  ;;  %1539 = vmatpush3.bf16.msra.mxu0 %v1663_v36 }
  0xb9   : > { %1540 = vmatprep.subr.bf16.mxu0 %v1817_v0 }
  0xbc   : > { %1541 = vmatpush3.bf16.msra.mxu0 %v1665_v37 }
  0xbd   : > { %1542 = vmatprep.subr.bf16.mxu0 %v1817_v0 }
  0xc0   : > { %1543 = vmatpush3.bf16.msra.mxu0 %v1667_v38 }
  0xc1   : > { %1544 = vmatprep.subr.bf16.mxu0 %v1817_v0 }
  0xc4   : > { %1545 = vmatpush3.bf16.msra.mxu0 %v1669_v39 }
  0xc5   : > { %1546 = vmatprep.subr.bf16.mxu0 %v1817_v0 }
  0xc8   : > { %1547 = vmatpush3.bf16.msra.mxu0 %v1671_v40 }
  0xc9   : > { %1548 = vmatprep.subr.bf16.mxu0 %v1817_v0 }
  0xcc   : > { %1549 = vmatpush3.bf16.msra.mxu0 %v1673_v41 }
  0xcd   : > { %1550 = vmatprep.subr.bf16.mxu0 %v1817_v0 }
  0xd0   : > { %1551 = vmatpush3.bf16.msra.mxu0 %v1675_v42 }
  0xd1   : > { %1552 = vmatprep.subr.bf16.mxu0 %v1817_v0 }
  0xd4   : > { %1553 = vmatpush3.bf16.msra.mxu0 %v1677_v43 }
 0x16a   : > { %v658_v44 = vpop.f32.mrb[0].mxu0  ;;  %v746_v46 = vpop.f32.mrb[0].mxu1 }
 0x16b   : > { %v1476_v47 = vpop.f32.mrb[1].mxu0  ;;  %v841_v48 = vsub.f32 %v658_v44, %v746_v46  ;;  %v1496_v49 = vpop.f32.mrb[1].mxu1 }
 0x16c   : > { %v661_v50 = vpop.f32.mrb[2].mxu0  ;;  %v749_v51 = vpop.f32.mrb[2].mxu1 }
 0x16d   : > { %v1477_v52 = vpop.f32.mrb[3].mxu0  ;;  %v848_v53 = vadd.f32 %v1374_v45, %v841_v48  ;;  %v1497_v54 = vpop.f32.mrb[3].mxu1 }
 0x16f   : > { %v858_v55 = vmax.f32 %v848_v53, 0.0 }
 0x171   : > { %v859_v57 = vpack.c.bf16 %v858_v55, %v858_v55 }
 0x173   : > { %1535 = vmatmul.mubr.bf16.vlgmr.msra.gmra.mrb[4].mxu1 %v859_v57 }
 0x174   : > { %1559 = vmatpush3.bf16.msra.mxu1 %v1664_v56  ;;  %1574 = vmatprep.mubr.msk.bf16.mxu1 %vm1818_vm0, %v1817_v0 }
 0x175   : > { %1560 = vmatprep.subr.bf16.mxu1 %v1817_v0 }
 0x178   : > { %1561 = vmatpush3.bf16.msra.mxu1 %v1666_v58 }
 0x179   : > { %1562 = vmatprep.subr.bf16.mxu1 %v1817_v0 }
 0x17c   : > { %1563 = vmatpush3.bf16.msra.mxu1 %v1668_v59 }
 0x17d   : > { %1564 = vmatprep.subr.bf16.mxu1 %v1817_v0 }
 0x180   : > { %1565 = vmatpush3.bf16.msra.mxu1 %v1670_v60 }
 0x181   : > { %1566 = vmatprep.subr.bf16.mxu1 %v1817_v0 }
 0x184   : > { %1567 = vmatpush3.bf16.msra.mxu1 %v1672_v61 }
 0x185   : > { %1568 = vmatprep.subr.bf16.mxu1 %v1817_v0 }
 0x188   : > { %1569 = vmatpush3.bf16.msra.mxu1 %v1674_v62 }
 0x189   : > { %1570 = vmatprep.subr.bf16.mxu1 %v1817_v0 }
 0x18a   : > { %v835_v1 = vpop.f32.mrb[4].mxu0 }
 0x18b   : > { %v849_v2 = vsub.f32 %v835_v1, %v658_v44  ;;  %v1516_v3 = vpop.f32.mrb[5].mxu0 }
 0x18c   : > { %v838_v5 = vpop.f32.mrb[6].mxu0  ;;  %1571 = vmatpush3.bf16.msra.mxu1 %v1676_v63 }
 0x18d   : > { %v850_v6 = vsub.f32 %v849_v2, %v746_v46  ;;  %v1517_v7 = vpop.f32.mrb[7].mxu0  ;;  %1572 = vmatprep.subr.bf16.mxu1 %v1817_v0 }
 0x18f   : > { %v857_v9 = vadd.f32 %v1375_v4, %v850_v6 }
 0x190   : > { %1573 = vmatpush3.bf16.msra.mxu1 %v1678_v8 }
 0x191   : > { %v860_v10 = vpack.c.bf16 %v857_v9, %v857_v9 }
 0x193   : > { %v1087_v11 = vadd.bf16 %v860_v10, %v859_v57  ;;  %1555 = vmatmul.mubr.bf16.vlgmr.msra.gmra.mrb[8].mxu0 %v860_v10 }
 0x195   : > { %1575 = vmatmul.mubr.bf16.vlgmr.msra.gmra.mrb[8].mxu1 %v1087_v11 }
 0x246   : > { %v993_v12 = vpop.f32.mrb[4].mxu1 }
 0x247   : > { %v1536_v13 = vpop.f32.mrb[5].mxu1 }
 0x248   : > { %v996_v14 = vpop.f32.mrb[6].mxu1 }
 0x249   : > { %v1537_v15 = vpop.f32.mrb[7].mxu1 }
 0x266   : > { %v1081_v17 = vpop.f32.mrb[8].mxu0 }
 0x267   : > { %v1176_v18 = vsub.f32 %v993_v12, %v1081_v17  ;;  %v1556_v19 = vpop.f32.mrb[9].mxu0 }
 0x268   : > { %v1084_v20 = vpop.f32.mrb[10].mxu0  ;;  %v1170_v0 = vpop.f32.mrb[8].mxu1 }
 0x269   : > { %v1183_v21 = vadd.f32 %v1400_v16, %v1176_v18  ;;  %v1184_v22 = vsub.f32 %v1170_v0, %v993_v12  ;;  %v1557_v23 = vpop.f32.mrb[11].mxu0  ;;  %v1576_v24 = vpop.f32.mrb[9].mxu1 }
 0x26a   : > { %v1173_v26 = vpop.f32.mrb[10].mxu1 }
 0x26b   : > { %v1193_v27 = vmax.f32 %v1183_v21, 0.0  ;;  %v1185_v28 = vsub.f32 %v1184_v22, %v1081_v17  ;;  %v1577_v29 = vpop.f32.mrb[11].mxu1 }
 0x26d   : > { %1194 = vst [vmem:[%s518_s24] sm:$0xff] %v1193_v27  ;;  %v1192_v30 = vadd.f32 %v1401_v25, %v1185_v28 }
 0x26f   : > { %1195 = vst [vmem:[%s522_s27] sm:$0xff] %v1192_v30 }
 0x270 PF: > { %s2213_s15 = sld [smem:[#allocation12_spill]] }
 0x276   : > { %s27_s25 = sadd.s32 1, %s2213_s15  }
 0x277   : > { %p24_p6 = scmp.ge.s32.totalorder %s27_s25, 4  }
 0x279   :  { %26 = sbr.rel (!%p24_p6) target bundleno = 6 (0x6), region = 130 }
 0x280   :  { %1229 = vsyncpa [#allocation3], 1 }
 0x281   :  { %1231 = vsyncpa [#allocation3 + $0x1], 1 }
 0x282   :  { %1232 = vsyncpa [#allocation5], 1 }
 0x283   :  { %1233 = vsyncpa [#allocation8], 1 }

</bundles_post_ra>
